<compile_context>
chip_gen: v6e
topology: v6e:2x2x1
jax: 0.10.0
libtpu: 0.0.40
codegen_flags: <defaults>
</compile_context>

<pallas_src>
import jax
import jax.numpy as jnp
from jax.experimental import pallas as pl
from jax.experimental.pallas import tpu as pltpu

EPS = 1e-5  # nn.LayerNorm default


def _round_up(a: int, b: int) -> int:
    return (a + b - 1) // b * b


def _min_row_tile(dtype) -> int:
    # f32 -> 8 sublanes, bf16 -> 16, int8/fp8 -> 32 (packed-sublane min tile).
    return 8 * max(1, 4 // jnp.dtype(dtype).itemsize)


def _vmem_capacity_bytes() -> int:
    try:
        info = pltpu.get_tpu_info()
        cap = getattr(info, "vmem_capacity_bytes", None)
        if cap:
            return int(cap)
    except Exception:
        pass
    return 64 << 20  # conservative fallback (v7x per-TensorCore VMEM)


def _choose_tile_r(R: int, min_rows: int, desired: int):
    """Pick a row tile (multiple of min_rows).  Prefer an exact divisor of R so the
    wrapper never pads/slices; fall back to padding otherwise."""
    desired = max(min_rows, desired // min_rows * min_rows)
    if R % min_rows == 0:
        best = None
        for t in range(min_rows, min(desired, R) + 1, min_rows):
            if R % t == 0:
                best = t
        if best is not None:
            return best, R  # no padding
    t = min(desired, _round_up(R, min_rows))
    return t, _round_up(R, t)


def prenorm_linear_kernel(x_ref, g_ref, b_ref, w_ref, wb_ref, o_ref, y_ref):
    # y_ref: (tile_r, D) bf16 VMEM scratch holding the LayerNorm output of the current
    # row tile.  Computed once per row tile (column index j == 0) and reused for every
    # weight-column tile; the column grid axis is "arbitrary" (sequential) so the
    # scratch persists across j.
    @pl.when(pl.program_id(1) == 0)
    def _():
        x = x_ref[...].astype(jnp.float32)
        d = x.shape[-1]
        inv_d = 1.0 / d
        s = jnp.sum(x, axis=-1, keepdims=True)
        sq = jnp.sum(x * x, axis=-1, keepdims=True)
        mean = s * inv_d
        var = jnp.maximum(sq * inv_d - mean * mean, 0.0)  # single-pass E[x^2]-mean^2
        xhat = (x - mean) * jax.lax.rsqrt(var + EPS)
        y = xhat * g_ref[...] + b_ref[...]                # LayerNorm affine (f32, VPU)
        y_ref[...] = y.astype(jnp.bfloat16)

    # Feed the MXU in bf16, accumulate in f32; bias add stays f32.
    out = jnp.dot(y_ref[...], w_ref[...],
                  preferred_element_type=jnp.float32) + wb_ref[...]
    o_ref[...] = out.astype(o_ref.dtype)


def prenorm(x, gamma, beta, w, wb, *, tile_r=None):
    """x: (B, N, D); gamma/beta: (D,); w: (D, D) pre-transposed for x @ w; wb: (D,)."""
    B, N, D = x.shape
    assert D % 128 == 0, "feature dim must be lane-dense (multiple of 128)"
    # TODO(synk): non-128-aligned dim would need lane masking in the LayerNorm
    #             reduction and a padded weight; not implemented.

    out_dtype = x.dtype
    R = B * N
    xb = jnp.dtype(x.dtype).itemsize
    ob = jnp.dtype(out_dtype).itemsize
    w_itemsize = 2  # bf16 weight

    # ---- Generation-aware budgets.
    vmem_cap = _vmem_capacity_bytes()
    small_vmem = vmem_cap <= (64 << 20)  # v7x: 64 MiB per TensorCore, 2 TCs
    if small_vmem:
        max_w_block_bytes = 12 << 20
        vmem_limit_cap = 56 << 20        # leave headroom below 64 MiB physical
        want_two_row_steps = True        # both v7x TensorCores need work
        default_tile_r = 256
    else:
        max_w_block_bytes = 48 << 20     # keep full weight resident for D <= ~4096
        vmem_limit_cap = min(100 << 20, vmem_cap - (16 << 20))
        want_two_row_steps = False       # single TensorCore (v5e/v6e)
        default_tile_r = 512             # v5e is the most HBM-re-stream sensitive
    desired_r = default_tile_r if tile_r is None else int(tile_r)

    # ---- Column tiling: largest lane-dense divisor of D whose bf16 weight block
    # fits the generation-aware cap (handles non-power-of-two multiples of 128).
    lanes = D // 128
    tile_n = 128
    for c in range(lanes, 0, -1):
        if lanes % c == 0 and D * (c * 128) * w_itemsize <= max_w_block_bytes:
            tile_n = c * 128
            break

    # ---- Row tiling: bounded by the VMEM budget left after the double-buffered
    # weight + bias rows + headroom; prefer a divisor of R so no pad/slice is needed.
    min_rows = max(_min_row_tile(x.dtype), 16)  # bf16 y-scratch wants 16-row tiles
    fixed = (2 * D * tile_n * w_itemsize        # weight double-buffer
             + 2 * (2 * D + tile_n) * 4         # gamma/beta/linear-bias rows (dbl-buf)
             + (4 << 20))                       # Mosaic internal scratch headroom
    per_row = 2 * D * xb + 2 * tile_n * ob + D * 2   # x dbl-buf + out dbl-buf + y-scratch
    budget_rows = max(min_rows, (vmem_limit_cap - fixed) // per_row)
    desired_r = max(min_rows, min(desired_r, budget_rows) // min_rows * min_rows)
    if want_two_row_steps and R >= 2 * min_rows:
        desired_r = min(desired_r, _round_up(pl.cdiv(R, 2), min_rows))
    tile_r, Rp = _choose_tile_r(R, min_rows, desired_r)

    grid = (Rp // tile_r, D // tile_n)  # column axis innermost -> x tile not re-DMA'd

    x2 = x.reshape(R, D)
    if Rp != R:
        # Padded rows produce y = beta -> beta @ W + wb in the padded output rows;
        # they are sliced off below, so values there are irrelevant.
        x2 = jnp.pad(x2, ((0, Rp - R), (0, 0)))
    g2 = gamma.reshape(1, D).astype(jnp.float32)
    b2 = beta.reshape(1, D).astype(jnp.float32)
    wb2 = wb.reshape(1, D).astype(jnp.float32)
    w_bf16 = w.astype(jnp.bfloat16)

    # ---- Scoped-VMEM request: actual need + headroom, clamped to the generation cap.
    needed = (2 * tile_r * D * xb              # x tiles (double-buffered)
              + 2 * tile_r * tile_n * ob       # output tiles
              + 2 * D * tile_n * w_itemsize    # weight tiles (bf16)
              + tile_r * D * 2                 # bf16 LayerNorm-output scratch
              + 2 * (2 * D + tile_n) * 4)      # gamma / beta / linear bias rows
    vmem_limit = int(min(max(needed + (4 << 20), 32 << 20), vmem_limit_cap))

    # ---- Cost estimate: weight is re-streamed once per row tile iff column-tiled.
    n_row_tiles = Rp // tile_r
    w_passes = 1 if tile_n == D else n_row_tiles
    cost = pl.CostEstimate(
        flops=2 * Rp * D * D + 8 * Rp * D,
        transcendentals=Rp,                      # rsqrt once per row (LN cached over j)
        bytes_accessed=Rp * D * (xb + ob) + w_passes * D * D * w_itemsize + 3 * D * 4,
    )

    out = pl.pallas_call(
        prenorm_linear_kernel,
        out_shape=jax.ShapeDtypeStruct((Rp, D), out_dtype),
        grid_spec=pltpu.PrefetchScalarGridSpec(
            num_scalar_prefetch=0,
            grid=grid,
            in_specs=[
                pl.BlockSpec((tile_r, D), lambda i, j: (i, 0)),    # x rows (full D for LN)
                pl.BlockSpec((1, D), lambda i, j: (0, 0)),         # gamma
                pl.BlockSpec((1, D), lambda i, j: (0, 0)),         # beta
                pl.BlockSpec((D, tile_n), lambda i, j: (0, j)),    # weight column tile (bf16)
                pl.BlockSpec((1, tile_n), lambda i, j: (0, j)),    # linear bias column tile
            ],
            out_specs=pl.BlockSpec((tile_r, tile_n), lambda i, j: (i, j)),
            scratch_shapes=[pltpu.VMEM((tile_r, D), jnp.bfloat16)],  # cached LN output
        ),
        compiler_params=pltpu.CompilerParams(
            dimension_semantics=("parallel", "arbitrary"),  # j sequential -> scratch persists
            vmem_limit_bytes=vmem_limit,
        ),
        cost_estimate=cost,
    )(x2, g2, b2, w_bf16, wb2)

    if Rp != R:
        out = out[:R]
    return out.reshape(B, N, D)


def prenorm_ref(x, gamma, beta, w, wb):
    xf = x.astype(jnp.float32)
    mean = jnp.mean(xf, axis=-1, keepdims=True)
    var = jnp.mean((xf - mean) ** 2, axis=-1, keepdims=True)
    y = (xf - mean) * jax.lax.rsqrt(var + EPS) * gamma + beta
    return (y @ w + wb).astype(x.dtype)


if __name__ == "__main__":
    B, N, D = 2, 8, 128  # small, lane-dense feature dim
    key = jax.random.PRNGKey(0)
    kx, kw, kb = jax.random.split(key, 3)

    x = jax.random.normal(kx, (B, N, D), dtype=jnp.float32)

    # LayerNorm params: torch defaults (weight=1, bias=0) — deterministic.
    gamma = jnp.ones((D,), jnp.float32)
    beta = jnp.zeros((D,), jnp.float32)

    # fn = Linear(D, D): deterministic random weights; stored pre-transposed so the
    # kernel computes y @ w + wb (== torch's y @ W.T + b).
    w = jax.random.normal(kw, (D, D), dtype=jnp.float32) * 0.05
    wb = jax.random.normal(kb, (D,), dtype=jnp.float32) * 0.05

    out = prenorm(x, gamma, beta, w, wb)
    out = jax.block_until_ready(out)

    ref = prenorm_ref(x, gamma, beta, w, wb)
    # Tolerance sized for the bf16-fed (f32-accumulated) MXU GEMM vs an f32 reference.
    assert jnp.allclose(out, ref, atol=2e-2, rtol=2e-2), "mismatch vs reference"
    print("KERNEL_OK")
</pallas_src>

<mosaic_0001>
module attributes {stable_mosaic.version = 11 : i64} {
  func.func @prenorm_linear_kernel(%arg0: i32, %arg1: i32, %arg2: memref<16x128xf32, #tpu.memory_space<vmem>>, %arg3: memref<1x128xf32, #tpu.memory_space<vmem>>, %arg4: memref<1x128xf32, #tpu.memory_space<vmem>>, %arg5: memref<128x128xbf16, #tpu.memory_space<vmem>>, %arg6: memref<1x128xf32, #tpu.memory_space<vmem>>, %arg7: memref<16x128xf32, #tpu.memory_space<vmem>>, %arg8: memref<16x128xbf16, #tpu.memory_space<vmem>>) attributes {dimension_semantics = [#tpu.dimension_semantics<parallel>, #tpu.dimension_semantics<arbitrary>], iteration_bounds = array<i64: 1, 1>, scalar_prefetch = 0 : i64, scratch_operands = 1 : i64, tpu.core_type = #tpu.core_type<tc>, window_params = [{transform_indices = @transform_0, window_bounds = array<i64: 16, 128>}, {pipeline_mode = #tpu.pipeline_mode<synchronous>, transform_indices = @transform_1, window_bounds = array<i64: 1, 128>}, {pipeline_mode = #tpu.pipeline_mode<synchronous>, transform_indices = @transform_2, window_bounds = array<i64: 1, 128>}, {transform_indices = @transform_3, window_bounds = array<i64: 128, 128>}, {transform_indices = @transform_4, window_bounds = array<i64: 1, 128>}, {transform_indices = @transform_5, window_bounds = array<i64: 16, 128>}]} {
    %c0_i32 = arith.constant 0 : i32
    %0 = arith.cmpi eq, %arg1, %c0_i32 : i32
    %1 = arith.extui %0 : i1 to i32
    %c0_i32_0 = arith.constant 0 : i32
    %2 = arith.cmpi ne, %1, %c0_i32_0 : i32
    scf.if %2 {
      %c0_8 = arith.constant 0 : index
      %c0_9 = arith.constant 0 : index
      %10 = vector.load %arg2[%c0_8, %c0_9] : memref<16x128xf32, #tpu.memory_space<vmem>>, vector<16x128xf32>
      %cst_10 = arith.constant dense<0.000000e+00> : vector<16xf32>
      %11 = vector.multi_reduction <add>, %10, %cst_10 [1] : vector<16x128xf32> to vector<16xf32>
      %12 = vector.shape_cast %11 : vector<16xf32> to vector<16x1xf32>
      %13 = arith.mulf %10, %10 : vector<16x128xf32>
      %cst_11 = arith.constant dense<0.000000e+00> : vector<16xf32>
      %14 = vector.multi_reduction <add>, %13, %cst_11 [1] : vector<16x128xf32> to vector<16xf32>
      %15 = vector.shape_cast %14 : vector<16xf32> to vector<16x1xf32>
      %cst_12 = arith.constant 7.812500e-03 : f32
      %16 = vector.broadcast %cst_12 : f32 to vector<16x1xf32>
      %17 = arith.mulf %12, %16 : vector<16x1xf32>
      %cst_13 = arith.constant 7.812500e-03 : f32
      %18 = vector.broadcast %cst_13 : f32 to vector<16x1xf32>
      %19 = arith.mulf %15, %18 : vector<16x1xf32>
      %20 = arith.mulf %17, %17 : vector<16x1xf32>
      %21 = arith.subf %19, %20 : vector<16x1xf32>
      %cst_14 = arith.constant 0.000000e+00 : f32
      %22 = vector.broadcast %cst_14 : f32 to vector<16x1xf32>
      %23 = arith.maximumf %21, %22 : vector<16x1xf32>
      %24 = vector.broadcast %17 : vector<16x1xf32> to vector<16x128xf32>
      %25 = arith.subf %10, %24 : vector<16x128xf32>
      %cst_15 = arith.constant 9.99999974E-6 : f32
      %26 = vector.broadcast %cst_15 : f32 to vector<16x1xf32>
      %27 = arith.addf %23, %26 : vector<16x1xf32>
      %28 = math.rsqrt %27 : vector<16x1xf32>
      %29 = vector.broadcast %28 : vector<16x1xf32> to vector<16x128xf32>
      %30 = arith.mulf %25, %29 : vector<16x128xf32>
      %c0_16 = arith.constant 0 : index
      %c0_17 = arith.constant 0 : index
      %31 = vector.load %arg3[%c0_16, %c0_17] : memref<1x128xf32, #tpu.memory_space<vmem>>, vector<1x128xf32>
      %32 = vector.broadcast %31 : vector<1x128xf32> to vector<16x128xf32>
      %33 = arith.mulf %30, %32 : vector<16x128xf32>
      %c0_18 = arith.constant 0 : index
      %c0_19 = arith.constant 0 : index
      %34 = vector.load %arg4[%c0_18, %c0_19] : memref<1x128xf32, #tpu.memory_space<vmem>>, vector<1x128xf32>
      %35 = vector.broadcast %34 : vector<1x128xf32> to vector<16x128xf32>
      %36 = arith.addf %33, %35 : vector<16x128xf32>
      %37 = arith.truncf %36 : vector<16x128xf32> to vector<16x128xbf16>
      %c0_20 = arith.constant 0 : index
      %c0_21 = arith.constant 0 : index
      %38 = vector.load %arg8[%c0_20, %c0_21] : memref<16x128xbf16, #tpu.memory_space<vmem>>, vector<16x128xbf16>
      tpu.vector_store %arg8[%c0_20, %c0_21], %37 {strides = array<i32>} : memref<16x128xbf16, #tpu.memory_space<vmem>>, vector<16x128xbf16>,
    } else {
    }
    %c0 = arith.constant 0 : index
    %c0_1 = arith.constant 0 : index
    %3 = vector.load %arg8[%c0, %c0_1] : memref<16x128xbf16, #tpu.memory_space<vmem>>, vector<16x128xbf16>
    %c0_2 = arith.constant 0 : index
    %c0_3 = arith.constant 0 : index
    %4 = vector.load %arg5[%c0_2, %c0_3] : memref<128x128xbf16, #tpu.memory_space<vmem>>, vector<128x128xbf16>
    %cst = arith.constant dense<0.000000e+00> : vector<16x128xf32>
    %5 = tpu.matmul %3, %4, %cst {dimension_numbers = #tpu.dot_dimension_numbers<[1], [0], [0], [1], [0, 0, 1, 1], [], []>} : vector<16x128xbf16>, vector<128x128xbf16>, vector<16x128xf32> -> vector<16x128xf32>
    %c0_4 = arith.constant 0 : index
    %c0_5 = arith.constant 0 : index
    %6 = vector.load %arg6[%c0_4, %c0_5] : memref<1x128xf32, #tpu.memory_space<vmem>>, vector<1x128xf32>
    %7 = vector.broadcast %6 : vector<1x128xf32> to vector<16x128xf32>
    %8 = arith.addf %5, %7 : vector<16x128xf32>
    %c0_6 = arith.constant 0 : index
    %c0_7 = arith.constant 0 : index
    %9 = vector.load %arg7[%c0_6, %c0_7] : memref<16x128xf32, #tpu.memory_space<vmem>>, vector<16x128xf32>
    tpu.vector_store %arg7[%c0_6, %c0_7], %8 {strides = array<i32>} : memref<16x128xf32, #tpu.memory_space<vmem>>, vector<16x128xf32>,
    return
  }
  func.func @transform_0(%arg0: i32, %arg1: i32) -> (i32, i32) {
    %c0_i32 = arith.constant 0 : i32
    %c0_i32_0 = arith.constant 0 : i32
    return %arg0, %c0_i32 : i32, i32
  }
  func.func @transform_1(%arg0: i32, %arg1: i32) -> (i32, i32) {
    %c0_i32 = arith.constant 0 : i32
    %c0_i32_0 = arith.constant 0 : i32
    %c0_i32_1 = arith.constant 0 : i32
    return %c0_i32, %c0_i32_0 : i32, i32
  }
  func.func @transform_2(%arg0: i32, %arg1: i32) -> (i32, i32) {
    %c0_i32 = arith.constant 0 : i32
    %c0_i32_0 = arith.constant 0 : i32
    %c0_i32_1 = arith.constant 0 : i32
    return %c0_i32, %c0_i32_0 : i32, i32
  }
  func.func @transform_3(%arg0: i32, %arg1: i32) -> (i32, i32) {
    %c0_i32 = arith.constant 0 : i32
    %c0_i32_0 = arith.constant 0 : i32
    return %c0_i32, %arg1 : i32, i32
  }
  func.func @transform_4(%arg0: i32, %arg1: i32) -> (i32, i32) {
    %c0_i32 = arith.constant 0 : i32
    %c0_i32_0 = arith.constant 0 : i32
    return %c0_i32, %arg1 : i32, i32
  }
  func.func @transform_5(%arg0: i32, %arg1: i32) -> (i32, i32) {
    %c0_i32 = arith.constant 0 : i32
    return %arg0, %arg1 : i32, i32
  }
}

</mosaic_0001>

<bundles_post_ra>
// kernel: tpu_custom_call.1
= control target key start
LH: loop header
LB: loop body
LE: loop exit
PB: predicated region body
PF: predicated region fallthrough
CT: control target
= control target key end

     0   :  { %10 = vsyncpa [#allocation4], 0  ;;  %s453_s0 = inlined_call_operand.hbm [shape: f32[16,128], index: 0, kind: input, shape index: {}]   ;;  %s454_s1 = inlined_call_operand.vmem [shape: f32[1,128], index: 1, kind: input, shape index: {}]   ;;  %s455_s2 = inlined_call_operand.vmem [shape: f32[1,128], index: 2, kind: input, shape index: {}]   ;;  %s456_s3 = inlined_call_operand.hbm [shape: bf16[128,128], index: 3, kind: input, shape index: {}]   ;;  %s457_s4 = inlined_call_operand.vmem [shape: f32[1,128], index: 4, kind: input, shape index: {}]   ;;  %s458_s5 = inlined_call_operand.hbm [shape: f32[16,128], index: 5, kind: output, shape index: {}]  }
   0x1   :  { %11 = vsyncpa [#allocation7], 0 }
   0x2   :  { %12 = vsyncpa [#allocation5], 0  ;;  %s390_s18 = smov [#allocation3]  }
   0x3   :  { %s18_s19 = sshll.u32 %s390_s18, 4  ;;  %s19_s19 = int_to_ptr.vmem [resolvable:$true] %s18_s19 }
   0x4   :  { %s332_s20 = scalar_lea.vmem %s19_s19, 256  ;;  %p337_p1 = scmp.lt.s32.totalorder %s19_s19, %s19_s19 }
   0x5   :  { %p333_p0 = scmp.ne.s32.totalorder %s19_s19, %s332_s20  ;;  %p338_p2 = scmp.lt.s32.totalorder %s332_s20, %s332_s20 }
   0x7   :  { %p339_p3 = por %p338_p2, %p337_p1 }
   0x9   :  { %p340_p4 = pnand %p339_p3, %p333_p0 }
   0xb   :  { %343 = shalt.err (!%p340_p4)
}
   0xc   :  { %s391_s21 = smov 128   ;;  %s392_s22 = smov 8  }
   0xd   :  { %24 = dma.hbm_to_vmem [thread:$0]  %s453_s0, 256, %s19_s19, [#allocation4], %s391_s21, %s391_s21, %s392_s22  }
   0xe   :  { %s393_s25 = smov [#allocation6]  }
   0xf   :  { %s34_s26 = sshll.u32 %s393_s25, 4  ;;  %s35_s26 = int_to_ptr.vmem [resolvable:$true] %s34_s26 }
  0x10   :  { %s352_s27 = scalar_lea.vmem %s35_s26, 1024  ;;  %p357_p6 = scmp.lt.s32.totalorder %s35_s26, %s35_s26 }
  0x11   :  { %p353_p5 = scmp.ne.s32.totalorder %s35_s26, %s352_s27  ;;  %p358_p7 = scmp.lt.s32.totalorder %s352_s27, %s352_s27 }
  0x13   :  { %p359_p8 = por %p358_p7, %p357_p6 }
  0x15   :  { %p360_p9 = pnand %p359_p8, %p353_p5 }
  0x17   :  { %363 = shalt.err (!%p360_p9)
}
  0x18   :  { %s394_s28 = smov 64   ;;  %s395_s29 = smov 4  }
  0x19   :  { %40 = dma.hbm_to_vmem [thread:$0]  %s456_s3, 1024, %s35_s26, [#allocation7], %s394_s28, %s394_s28, %s395_s29  }
  0x1a   :  { %384 = dma.done.wait [#allocation4], 256  }
  0x1b   :  { %385 = vsyncadd [#allocation4], 4294967040 }
  0x1c   :  { %386 = dma.done.wait [#allocation7], 1024  }
  0x1d   :  { %387 = vsyncadd [#allocation7], 4294966272  ;;  %v54_v0 = vld [vmem:[#allocation3] sm:$0xff]  ;;  %v55_v1 = vld [vmem:[#allocation3 + $0x8] sm:$0xff]  ;;  %v396_v5 = vmov 0.0   ;;  %vm397_vm0 = vmmov 0  }
  0x1e   :  { %56 = vadd.xlane.f32.xlu0 %v54_v0  ;;  %v60_v2 = vmul.f32 %v54_v0, %v54_v0  ;;  %v61_v3 = vmul.f32 %v55_v1, %v55_v1  ;;  %v311_v4 = vld [vmem:[#allocation6 + $0x38] sm:$0xff]   ;;  %282 = vmatprep.subr.bf16.mxu0 %v396_v5  ;;  %v312_v6 = vld [vmem:[#allocation6 + $0x30] sm:$0xff]   ;;  %v313_v7 = vld [vmem:[#allocation6 + $0x28] sm:$0xff]  }
  0x1f   :  { %283 = vmatpush3.bf16.msra.mxu0 %v311_v4  ;;  %v314_v8 = vld [vmem:[#allocation6 + $0x20] sm:$0xff]   ;;  %v315_v9 = vld [vmem:[#allocation6 + $0x18] sm:$0xff]   ;;  %v316_v10 = vld [vmem:[#allocation6 + $0x10] sm:$0xff]   ;;  %298 = vmatprep.mubr.msk.bf16.mxu0 %vm397_vm0, %v396_v5 }
  0x20   :  { %62 = vadd.xlane.f32.xlu1 %v60_v2  ;;  %284 = vmatprep.subr.bf16.mxu0 %v396_v5  ;;  %v317_v11 = vld [vmem:[#allocation6 + $0x8] sm:$0xff]   ;;  %v318_v12 = vld [vmem:[#allocation6] sm:$0xff]  }
  0x21   :  { %v252_v32 = vld [vmem:[%s454_s1] ss:$0 sm:$0xff]  ;;  %s398_s1 = smov [#allocation8]  }
  0x22   :  { %58 = vadd.xlane.f32.xlu0 %v55_v1  ;;  %v253_v37 = vld [vmem:[%s455_s2] ss:$0 sm:$0xff]  ;;  %s239_s11 = sshll.u32 %s398_s1, 4  ;;  %s240_s11 = int_to_ptr.vmem [resolvable:$true] %s239_s11 }
  0x23   :  { %285 = vmatpush3.bf16.msra.mxu0 %v312_v6  ;;  %v256_v43 = vld [vmem:[%s457_s4] ss:$0 sm:$0xff]  ;;  %s364_s2 = scalar_lea.vmem %s240_s11, 256  ;;  %p369_p11 = scmp.lt.s32.totalorder %s240_s11, %s240_s11 }
  0x24   :  { %64 = vadd.xlane.f32.xlu1 %v61_v3  ;;  %286 = vmatprep.subr.bf16.mxu0 %v396_v5  ;;  %p365_p10 = scmp.ne.s32.totalorder %s240_s11, %s364_s2  ;;  %p370_p12 = scmp.lt.s32.totalorder %s364_s2, %s364_s2 }
  0x26   :  { %p371_p13 = por %p370_p12, %p369_p11 }
  0x27   :  { %287 = vmatpush3.bf16.msra.mxu0 %v313_v7 }
  0x28   :  { %288 = vmatprep.subr.bf16.mxu0 %v396_v5  ;;  %p372_p0 = pnand %p371_p13, %p365_p10 }
  0x2b   :  { %289 = vmatpush3.bf16.msra.mxu0 %v314_v8 }
  0x2c   :  { %290 = vmatprep.subr.bf16.mxu0 %v396_v5 }
  0x2f   :  { %291 = vmatpush3.bf16.msra.mxu0 %v315_v9 }
  0x30   :  { %292 = vmatprep.subr.bf16.mxu0 %v396_v5 }
  0x33   :  { %293 = vmatpush3.bf16.msra.mxu0 %v316_v10 }
  0x34   :  { %294 = vmatprep.subr.bf16.mxu0 %v396_v5 }
  0x37   :  { %295 = vmatpush3.bf16.msra.mxu0 %v317_v11 }
  0x38   :  { %296 = vmatprep.subr.bf16.mxu0 %v396_v5 }
  0x3b   :  { %297 = vmatpush3.bf16.msra.mxu0 %v318_v12 }
  0xa7   :  { %v57_v13 = vpop.xlane.xlu0 %56 }
  0xa8   :  { %v66_v14 = vmul.f32 0.0078125, %v57_v13 }
  0xa9   :  { %v63_v15 = vpop.xlane.xlu1 %62 }
  0xaa   :  { %v70_v16 = vmul.f32 %v66_v14, %v66_v14  ;;  %v68_v17 = vmul.f32 0.0078125, %v63_v15  ;;  %v76_v29 = vsub.f32 %v54_v0, %v66_v14 }
  0xab   :  { %v59_v18 = vpop.xlane.xlu0 %58 }
  0xac   :  { %v72_v19 = vsub.f32 %v68_v17, %v70_v16  ;;  %v67_v20 = vmul.f32 0.0078125, %v59_v18 }
  0xad   :  { %v65_v21 = vpop.xlane.xlu1 %64 }
  0xae   :  { %v74_v22 = vmax.f32 %v72_v19, 0.0  ;;  %v71_v23 = vmul.f32 %v67_v20, %v67_v20  ;;  %v69_v24 = vmul.f32 0.0078125, %v65_v21  ;;  %v77_v33 = vsub.f32 %v55_v1, %v67_v20 }
  0xb0   :  { %v78_v25 = vadd.f32 1e-05, %v74_v22  ;;  %v73_v26 = vsub.f32 %v69_v24, %v71_v23 }
  0xb2   :  { %320 = vrsqrt.f32 %v78_v25  ;;  %v75_v27 = vmax.f32 %v73_v26, 0.0 }
  0xb4   :  { %v79_v28 = vadd.f32 1e-05, %v75_v27 }
  0xb6   :  { %322 = vrsqrt.f32 %v79_v28 }
  0xbf   :  { %v321_v30 = vpop.eup %320 }
  0xc0   :  { %v82_v31 = vmul.f32 %v321_v30, %v76_v29 }
  0xc2   :  { %v91_v35 = vmul.f32 %v252_v32, %v82_v31 }
  0xc3   :  { %v323_v34 = vpop.eup %322 }
  0xc4   :  { %v83_v36 = vmul.f32 %v323_v34, %v77_v33  ;;  %v100_v39 = vadd.f32 %v253_v37, %v91_v35 }
  0xc6   :  { %v92_v38 = vmul.f32 %v252_v32, %v83_v36 }
  0xc8   :  { %v101_v40 = vadd.f32 %v253_v37, %v92_v38 }
  0xca   :  { %v271_v41 = vpack.c.bf16 %v101_v40, %v100_v39 }
  0xcc   :  { %272 = vst [vmem:[#allocation2] sm:$0xff] %v271_v41  }
  0xd3   :  { %v319_v42 = vld [vmem:[#allocation2] sm:$0xff]  }
  0xd4   :  { %299 = vmatmul.mubr.bf16.vlgmr.msra.gmra.mxu0 %v319_v42 }
 0x194   :  { %v225_v44 = vpop.f32.mrf.mxu0 }
 0x195   :  { %v226_v45 = vadd.f32 %v256_v43, %v225_v44 }
 0x196   :  { %v300_v46 = vpop.f32.mrf.mxu0 }
 0x197   :  { %232 = vst [vmem:[#allocation8] sm:$0xff] %v226_v45 }
 0x198   :  { %v228_v47 = vpop.f32.mrf.mxu0 }
 0x199   :  { %v229_v48 = vadd.f32 %v256_v43, %v228_v47 }
 0x19a   :  { %v301_v49 = vpop.f32.mrf.mxu0 }
 0x19b   :  { %233 = vst [vmem:[#allocation8 + $0x8] sm:$0xff] %v229_v48 }
 0x19c   :  { %375 = shalt.err (!%p372_p0)
}
 0x19d   :  { %245 = dma.vmem_to_hbm [thread:$0]  %s240_s11, 256, %s458_s5, [#allocation5], %s391_s21, %s391_s21, %s392_s22  }
 0x19e   :  { %388 = dma.done.wait [#allocation5], 256  }
 0x19f   :  { %389 = vsyncadd [#allocation5], 4294967040 }
 0x1a0   :  { %249 = vsyncpa [#allocation4], 1 }
 0x1a1   :  { %250 = vsyncpa [#allocation7], 1 }
 0x1a2   :  { %251 = vsyncpa [#allocation5], 1 }

</bundles_post_ra>
